<compile_context>
chip_gen: v7x
topology: tpu7x:2x2x1
jax: 0.10.0
libtpu: 0.0.40
codegen_flags: <defaults>
</compile_context>

<pallas_src>
import jax
import jax.numpy as jnp
from jax.experimental import pallas as pl
from jax.experimental.pallas import tpu as pltpu


def _round_up(x: int, m: int) -> int:
    return (x + m - 1) // m * m


def _prediction_kernel(h_ref, w_ref, b_ref, m_ref, out_ref):
    """Fused value+policy head for one batch tile.

    h_ref  : (TB, H)  activations (native dtype, fed straight to the MXU)
    w_ref  : (H, P)   fused weights  [wv | wp | 0-pad]      (same dtype as h)
    b_ref  : (1, P)   fused bias f32 [bv | bp | -inf-pad]
    m_ref  : (1, P)   softmax mask f32: -inf on col 0 (value), 0 elsewhere
    out_ref: (TB, P)  col 0 = value, cols 1..A = log-policy, rest = pad
    """
    # Single MXU pass; f32 accumulation; no upcast of the operands.
    fused = jnp.dot(h_ref[...], w_ref[...],
                    preferred_element_type=jnp.float32) + b_ref[...]

    # Policy logits: value column knocked out by the additive mask, padded
    # columns already hold -inf from the bias pad -> no iota, no big selects.
    pol = fused + m_ref[...]

    # Numerically-stable log-softmax over the lane-dense policy columns.
    mx = jnp.max(pol, axis=-1, keepdims=True)
    shifted = pol - mx
    lse = jnp.log(jnp.sum(jnp.exp(shifted), axis=-1, keepdims=True))
    logp = shifted - lse

    # (1, P) predicate: True only on the value column; broadcast select.
    is_value = m_ref[...] < 0.0
    out_ref[...] = jnp.where(is_value, fused, logp).astype(out_ref.dtype)


def prediction_forward(h, wv, bv, wp, bp, *, batch_tile=256):
    """Pallas wrapper.

    h  : (B, hidden)
    wv : (hidden, 1)   value weight (already transposed vs PyTorch)
    bv : (1, 1)        value bias
    wp : (hidden, A)   policy weight (already transposed vs PyTorch)
    bp : (1, A)        policy bias
    returns (v: (B, 1), log_pi: (B, A))
    """
    B, H = h.shape
    A = wp.shape[1]
    out_dtype = h.dtype
    cdt = h.dtype            # MXU operand dtype; weight is cast to match h so
                             # jnp.dot never silently promotes.

    # ---- fuse the two heads into one lane-padded weight/bias/mask ---------
    P = max(_round_up(1 + A, 128), 128)
    w_fused = jnp.zeros((H, P), dtype=cdt)
    w_fused = w_fused.at[:, 0:1].set(wv.astype(cdt))
    w_fused = w_fused.at[:, 1:1 + A].set(wp.astype(cdt))

    b_fused = jnp.full((1, P), -jnp.inf, dtype=jnp.float32)
    b_fused = b_fused.at[:, 0:1].set(bv.astype(jnp.float32).reshape(1, 1))
    b_fused = b_fused.at[:, 1:1 + A].set(bp.astype(jnp.float32).reshape(1, A))

    # Additive softmax mask: -inf on the value column, 0 on everything else
    # (padded columns are already -inf via the bias pad).
    m_fused = jnp.zeros((1, P), dtype=jnp.float32).at[:, 0:1].set(-jnp.inf)

    # ---- adaptive batch tiling ---------------------------------------------
    sub = 16 if jnp.dtype(cdt).itemsize < 4 else 8   # sublane packing
    TB = min(batch_tile, _round_up(B, sub))
    B_pad = _round_up(B, TB)
    # v7x megacore: if everything fits one tile but the tile is non-trivial,
    # split into two tiles so "parallel" can shard across the 2 TensorCores.
    if B_pad // TB == 1 and TB > 2 * sub:
        TB = _round_up(pl.cdiv(TB, 2), sub)
        B_pad = _round_up(B, TB)
    if B_pad != B:
        h = jnp.pad(h, ((0, B_pad - B), (0, 0)))
    grid = (B_pad // TB,)

    # ---- generation-aware VMEM budget --------------------------------------
    isz = lambda d: jnp.dtype(d).itemsize
    vmem_est = (2 * TB * H * isz(cdt)            # double-buffered h tiles
                + 2 * TB * P * isz(out_dtype)    # double-buffered out tiles
                + 1 * H * P * isz(cdt)           # single-buffered fused weight
                + 2 * 2 * P * 4                  # bias + mask
                + (4 << 20))                     # headroom
    try:
        vmem_cap = int(pltpu.get_tpu_info().vmem_capacity_bytes)
    except Exception:                            # pragma: no cover
        vmem_cap = 64 << 20                      # conservative (v7x-sized)
    vmem_limit = int(min(max(vmem_est, 16 << 20), int(vmem_cap * 0.85)))

    # ---- pallas_call --------------------------------------------------------
    def _run(single_buffer_consts: bool):
        def const_spec(shape):
            # Constant index_map -> DMA'd once; single-buffer it to halve the
            # resident weight footprint (important on v7x's 64 MiB VMEM).
            if single_buffer_consts:
                return pl.BlockSpec(shape, lambda i: (0, 0),
                                    pipeline_mode=pl.Buffered(1))
            return pl.BlockSpec(shape, lambda i: (0, 0))

        return pl.pallas_call(
            _prediction_kernel,
            out_shape=jax.ShapeDtypeStruct((B_pad, P), out_dtype),
            grid_spec=pltpu.PrefetchScalarGridSpec(
                num_scalar_prefetch=0,
                grid=grid,
                in_specs=[
                    pl.BlockSpec((TB, H), lambda i: (i, 0)),  # activations
                    const_spec((H, P)),                       # fused weight
                    const_spec((1, P)),                       # fused bias
                    const_spec((1, P)),                       # softmax mask
                ],
                out_specs=pl.BlockSpec((TB, P), lambda i: (i, 0)),
            ),
            compiler_params=pltpu.CompilerParams(
                dimension_semantics=("parallel",),            # megacore-friendly
                vmem_limit_bytes=vmem_limit,
            ),
        )(h, w_fused, b_fused, m_fused)

    try:
        out = _run(True)
    except Exception:
        # Fallback if this JAX build rejects Buffered(1) single-buffering.
        out = _run(False)

    out = out[:B]                 # one slice; columns split below
    v = out[:, 0:1]
    log_pi = out[:, 1:1 + A]
    return v, log_pi


def _reference(h, wv, bv, wp, bp):
    v = h @ wv + bv
    logits = h @ wp + bp
    return v, jax.nn.log_softmax(logits, axis=-1)


if __name__ == "__main__":
    # small, deterministic setup consistent with Prediction(hidden, action_dim)
    B, HIDDEN, ACTION_DIM = 8, 32, 16

    key = jax.random.PRNGKey(0)
    k_h, k_wv, k_bv, k_wp, k_bp = jax.random.split(key, 5)

    # PyTorch nn.Linear default init: U(-1/sqrt(fan_in), 1/sqrt(fan_in))
    bound = 1.0 / (HIDDEN ** 0.5)
    h = jax.random.normal(k_h, (B, HIDDEN), dtype=jnp.float32)
    wv = jax.random.uniform(k_wv, (HIDDEN, 1), jnp.float32, -bound, bound)
    bv = jax.random.uniform(k_bv, (1, 1), jnp.float32, -bound, bound)
    wp = jax.random.uniform(k_wp, (HIDDEN, ACTION_DIM), jnp.float32, -bound, bound)
    bp = jax.random.uniform(k_bp, (1, ACTION_DIM), jnp.float32, -bound, bound)

    v_out, logp_out = prediction_forward(h, wv, bv, wp, bp)
    jax.block_until_ready((v_out, logp_out))

    v_ref, logp_ref = _reference(h, wv, bv, wp, bp)
    assert v_out.shape == (B, 1) and logp_out.shape == (B, ACTION_DIM)
    assert jnp.allclose(v_out, v_ref, atol=1e-5, rtol=1e-5)
    assert jnp.allclose(logp_out, logp_ref, atol=1e-5, rtol=1e-5)
    # log_softmax rows must exp-sum to 1
    assert jnp.allclose(jnp.exp(logp_out).sum(-1), 1.0, atol=1e-5)

    print("KERNEL_OK")
</pallas_src>

<mosaic_0001>
module attributes {stable_mosaic.version = 11 : i64} {
  func.func @_prediction_kernel(%arg0: i32, %arg1: memref<8x32xf32, #tpu.memory_space<vmem>>, %arg2: memref<32x128xf32, #tpu.memory_space<vmem>>, %arg3: memref<1x128xf32, #tpu.memory_space<vmem>>, %arg4: memref<1x128xf32, #tpu.memory_space<vmem>>, %arg5: memref<8x128xf32, #tpu.memory_space<vmem>>) attributes {dimension_semantics = [#tpu.dimension_semantics<parallel>], iteration_bounds = array<i64: 1>, scalar_prefetch = 0 : i64, scratch_operands = 0 : i64, tpu.core_type = #tpu.core_type<tc>, window_params = [{transform_indices = @transform_0, window_bounds = array<i64: 8, 32>}, {pipeline_mode = #tpu.pipeline_mode<synchronous>, transform_indices = @transform_1, window_bounds = array<i64: 32, 128>}, {pipeline_mode = #tpu.pipeline_mode<synchronous>, transform_indices = @transform_2, window_bounds = array<i64: 1, 128>}, {pipeline_mode = #tpu.pipeline_mode<synchronous>, transform_indices = @transform_3, window_bounds = array<i64: 1, 128>}, {transform_indices = @transform_4, window_bounds = array<i64: 8, 128>}]} {
    %c0 = arith.constant 0 : index
    %c0_0 = arith.constant 0 : index
    %0 = vector.load %arg1[%c0, %c0_0] : memref<8x32xf32, #tpu.memory_space<vmem>>, vector<8x32xf32>
    %c0_1 = arith.constant 0 : index
    %c0_2 = arith.constant 0 : index
    %1 = vector.load %arg2[%c0_1, %c0_2] : memref<32x128xf32, #tpu.memory_space<vmem>>, vector<32x128xf32>
    %cst = arith.constant dense<0.000000e+00> : vector<8x128xf32>
    %2 = tpu.matmul %0, %1, %cst {dimension_numbers = #tpu.dot_dimension_numbers<[1], [0], [0], [1], [0, 0, 1, 1], [], []>} : vector<8x32xf32>, vector<32x128xf32>, vector<8x128xf32> -> vector<8x128xf32>
    %c0_3 = arith.constant 0 : index
    %c0_4 = arith.constant 0 : index
    %3 = vector.load %arg3[%c0_3, %c0_4] : memref<1x128xf32, #tpu.memory_space<vmem>>, vector<1x128xf32>
    %4 = vector.broadcast %3 : vector<1x128xf32> to vector<8x128xf32>
    %5 = arith.addf %2, %4 : vector<8x128xf32>
    %c0_5 = arith.constant 0 : index
    %c0_6 = arith.constant 0 : index
    %6 = vector.load %arg4[%c0_5, %c0_6] : memref<1x128xf32, #tpu.memory_space<vmem>>, vector<1x128xf32>
    %7 = vector.broadcast %6 : vector<1x128xf32> to vector<8x128xf32>
    %8 = arith.addf %5, %7 : vector<8x128xf32>
    %cst_7 = arith.constant dense<0xFF800000> : vector<8xf32>
    %9 = vector.multi_reduction <maximumf>, %8, %cst_7 [1] : vector<8x128xf32> to vector<8xf32>
    %10 = vector.shape_cast %9 : vector<8xf32> to vector<8x1xf32>
    %11 = vector.broadcast %10 : vector<8x1xf32> to vector<8x128xf32>
    %12 = arith.subf %8, %11 : vector<8x128xf32>
    %13 = math.exp %12 : vector<8x128xf32>
    %cst_8 = arith.constant dense<0.000000e+00> : vector<8xf32>
    %14 = vector.multi_reduction <add>, %13, %cst_8 [1] : vector<8x128xf32> to vector<8xf32>
    %15 = vector.shape_cast %14 : vector<8xf32> to vector<8x1xf32>
    %16 = math.log %15 : vector<8x1xf32>
    %17 = vector.broadcast %16 : vector<8x1xf32> to vector<8x128xf32>
    %18 = arith.subf %12, %17 : vector<8x128xf32>
    %c0_9 = arith.constant 0 : index
    %c0_10 = arith.constant 0 : index
    %19 = vector.load %arg4[%c0_9, %c0_10] : memref<1x128xf32, #tpu.memory_space<vmem>>, vector<1x128xf32>
    %cst_11 = arith.constant 0.000000e+00 : f32
    %20 = vector.broadcast %cst_11 : f32 to vector<1x128xf32>
    %21 = arith.cmpf olt, %19, %20 : vector<1x128xf32>
    %22 = vector.shape_cast %21 : vector<1x128xi1> to vector<1x128xi1>
    %23 = vector.broadcast %22 : vector<1x128xi1> to vector<8x128xi1>
    %24 = arith.select %23, %5, %18 : vector<8x128xi1>, vector<8x128xf32>
    %c0_12 = arith.constant 0 : index
    %c0_13 = arith.constant 0 : index
    %25 = vector.load %arg5[%c0_12, %c0_13] : memref<8x128xf32, #tpu.memory_space<vmem>>, vector<8x128xf32>
    tpu.vector_store %arg5[%c0_12, %c0_13], %24 {strides = array<i32>} : memref<8x128xf32, #tpu.memory_space<vmem>>, vector<8x128xf32>,
    return
  }
  func.func @transform_0(%arg0: i32) -> (i32, i32) {
    %c0_i32 = arith.constant 0 : i32
    %c0_i32_0 = arith.constant 0 : i32
    return %arg0, %c0_i32 : i32, i32
  }
  func.func @transform_1(%arg0: i32) -> (i32, i32) {
    %c0_i32 = arith.constant 0 : i32
    %c0_i32_0 = arith.constant 0 : i32
    %c0_i32_1 = arith.constant 0 : i32
    return %c0_i32, %c0_i32_0 : i32, i32
  }
  func.func @transform_2(%arg0: i32) -> (i32, i32) {
    %c0_i32 = arith.constant 0 : i32
    %c0_i32_0 = arith.constant 0 : i32
    %c0_i32_1 = arith.constant 0 : i32
    return %c0_i32, %c0_i32_0 : i32, i32
  }
  func.func @transform_3(%arg0: i32) -> (i32, i32) {
    %c0_i32 = arith.constant 0 : i32
    %c0_i32_0 = arith.constant 0 : i32
    %c0_i32_1 = arith.constant 0 : i32
    return %c0_i32, %c0_i32_0 : i32, i32
  }
  func.func @transform_4(%arg0: i32) -> (i32, i32) {
    %c0_i32 = arith.constant 0 : i32
    %c0_i32_0 = arith.constant 0 : i32
    return %arg0, %c0_i32 : i32, i32
  }
}

module attributes {stable_mosaic.version = 11 : i64} {
  func.func @_prediction_kernel(%arg0: i32, %arg1: memref<8x32xf32, #tpu.memory_space<vmem>>, %arg2: memref<32x128xf32, #tpu.memory_space<vmem>>, %arg3: memref<1x128xf32, #tpu.memory_space<vmem>>, %arg4: memref<1x128xf32, #tpu.memory_space<vmem>>, %arg5: memref<8x128xf32, #tpu.memory_space<vmem>>) attributes {dimension_semantics = [#tpu.dimension_semantics<parallel>], iteration_bounds = array<i64: 1>, scalar_prefetch = 0 : i64, scratch_operands = 0 : i64, tpu.core_type = #tpu.core_type<tc>, window_params = [{transform_indices = @transform_0, window_bounds = array<i64: 8, 32>}, {pipeline_mode = #tpu.pipeline_mode<synchronous>, transform_indices = @transform_1, window_bounds = array<i64: 32, 128>}, {pipeline_mode = #tpu.pipeline_mode<synchronous>, transform_indices = @transform_2, window_bounds = array<i64: 1, 128>}, {pipeline_mode = #tpu.pipeline_mode<synchronous>, transform_indices = @transform_3, window_bounds = array<i64: 1, 128>}, {transform_indices = @transform_4, window_bounds = array<i64: 8, 128>}]} {
    %c0 = arith.constant 0 : index
    %c0_0 = arith.constant 0 : index
    %0 = vector.load %arg1[%c0, %c0_0] : memref<8x32xf32, #tpu.memory_space<vmem>>, vector<8x32xf32>
    %c0_1 = arith.constant 0 : index
    %c0_2 = arith.constant 0 : index
    %1 = vector.load %arg2[%c0_1, %c0_2] : memref<32x128xf32, #tpu.memory_space<vmem>>, vector<32x128xf32>
    %cst = arith.constant dense<0.000000e+00> : vector<8x128xf32>
    %2 = tpu.matmul %0, %1, %cst {dimension_numbers = #tpu.dot_dimension_numbers<[1], [0], [0], [1], [0, 0, 1, 1], [], []>} : vector<8x32xf32>, vector<32x128xf32>, vector<8x128xf32> -> vector<8x128xf32>
    %c0_3 = arith.constant 0 : index
    %c0_4 = arith.constant 0 : index
    %3 = vector.load %arg3[%c0_3, %c0_4] : memref<1x128xf32, #tpu.memory_space<vmem>>, vector<1x128xf32>
    %4 = vector.broadcast %3 : vector<1x128xf32> to vector<8x128xf32>
    %5 = arith.addf %2, %4 : vector<8x128xf32>
    %c0_5 = arith.constant 0 : index
    %c0_6 = arith.constant 0 : index
    %6 = vector.load %arg4[%c0_5, %c0_6] : memref<1x128xf32, #tpu.memory_space<vmem>>, vector<1x128xf32>
    %7 = vector.broadcast %6 : vector<1x128xf32> to vector<8x128xf32>
    %8 = arith.addf %5, %7 : vector<8x128xf32>
    %cst_7 = arith.constant dense<0xFF800000> : vector<8xf32>
    %9 = vector.multi_reduction <maximumf>, %8, %cst_7 [1] : vector<8x128xf32> to vector<8xf32>
    %10 = vector.shape_cast %9 : vector<8xf32> to vector<8x1xf32>
    %11 = vector.broadcast %10 : vector<8x1xf32> to vector<8x128xf32>
    %12 = arith.subf %8, %11 : vector<8x128xf32>
    %13 = math.exp %12 : vector<8x128xf32>
    %cst_8 = arith.constant dense<0.000000e+00> : vector<8xf32>
    %14 = vector.multi_reduction <add>, %13, %cst_8 [1] : vector<8x128xf32> to vector<8xf32>
    %15 = vector.shape_cast %14 : vector<8xf32> to vector<8x1xf32>
    %16 = math.log %15 : vector<8x1xf32>
    %17 = vector.broadcast %16 : vector<8x1xf32> to vector<8x128xf32>
    %18 = arith.subf %12, %17 : vector<8x128xf32>
    %c0_9 = arith.constant 0 : index
    %c0_10 = arith.constant 0 : index
    %19 = vector.load %arg4[%c0_9, %c0_10] : memref<1x128xf32, #tpu.memory_space<vmem>>, vector<1x128xf32>
    %cst_11 = arith.constant 0.000000e+00 : f32
    %20 = vector.broadcast %cst_11 : f32 to vector<1x128xf32>
    %21 = arith.cmpf olt, %19, %20 : vector<1x128xf32>
    %22 = vector.shape_cast %21 : vector<1x128xi1> to vector<1x128xi1>
    %23 = vector.broadcast %22 : vector<1x128xi1> to vector<8x128xi1>
    %24 = arith.select %23, %5, %18 : vector<8x128xi1>, vector<8x128xf32>
    %c0_12 = arith.constant 0 : index
    %c0_13 = arith.constant 0 : index
    %25 = vector.load %arg5[%c0_12, %c0_13] : memref<8x128xf32, #tpu.memory_space<vmem>>, vector<8x128xf32>
    tpu.vector_store %arg5[%c0_12, %c0_13], %24 {strides = array<i32>} : memref<8x128xf32, #tpu.memory_space<vmem>>, vector<8x128xf32>,
    return
  }
  func.func @transform_0(%arg0: i32) -> (i32, i32) {
    %c0_i32 = arith.constant 0 : i32
    %c0_i32_0 = arith.constant 0 : i32
    return %arg0, %c0_i32 : i32, i32
  }
  func.func @transform_1(%arg0: i32) -> (i32, i32) {
    %c0_i32 = arith.constant 0 : i32
    %c0_i32_0 = arith.constant 0 : i32
    %c0_i32_1 = arith.constant 0 : i32
    return %c0_i32, %c0_i32_0 : i32, i32
  }
  func.func @transform_2(%arg0: i32) -> (i32, i32) {
    %c0_i32 = arith.constant 0 : i32
    %c0_i32_0 = arith.constant 0 : i32
    %c0_i32_1 = arith.constant 0 : i32
    return %c0_i32, %c0_i32_0 : i32, i32
  }
  func.func @transform_3(%arg0: i32) -> (i32, i32) {
    %c0_i32 = arith.constant 0 : i32
    %c0_i32_0 = arith.constant 0 : i32
    %c0_i32_1 = arith.constant 0 : i32
    return %c0_i32, %c0_i32_0 : i32, i32
  }
  func.func @transform_4(%arg0: i32) -> (i32, i32) {
    %c0_i32 = arith.constant 0 : i32
    %c0_i32_0 = arith.constant 0 : i32
    return %arg0, %c0_i32 : i32, i32
  }
}

</mosaic_0001>

<bundles_post_ra>
// kernel: tpu_custom_call.1
= control target key start
LH: loop header
LB: loop body
LE: loop exit
PB: predicated region body
PF: predicated region fallthrough
CT: control target
= control target key end

     0   :  { %9 = vsyncpa [#allocation3], 0  ;;  %s365_s0 = inlined_call_operand.hbm [shape: f32[8,32], index: 0, kind: input, shape index: {}]   ;;  %s366_s1 = inlined_call_operand.hbm [shape: f32[32,128], index: 1, kind: input, shape index: {}]   ;;  %s367_s2 = inlined_call_operand.vmem [shape: f32[1,128], index: 2, kind: input, shape index: {}]   ;;  %s368_s3 = inlined_call_operand.vmem [shape: f32[1,128], index: 3, kind: input, shape index: {}]   ;;  %s369_s4 = inlined_call_operand.hbm [shape: f32[8,128], index: 4, kind: output, shape index: {}]  }
   0x1   :  { %10 = vsyncpa [#allocation6], 0 }
   0x2   :  { %11 = vsyncpa [#allocation4], 0  ;;  %s282_s15 = smov [#allocation2]   ;;  %s283_s17 = smov [#allocation5]  }
   0x3   :  { %s18_s16 = sshll.u32 %s282_s15, 4  ;;  %s27_s18 = sshll.u32 %s283_s17, 4  ;;  %s19_s16 = int_to_ptr.vmem [resolvable:$true] %s18_s16  ;;  %s316_s18 = int_to_ptr.vmem [resolvable:$true] %s27_s18 }
   0x4   :  { %s210_s21 = scalar_lea.hbm %s365_s0, 128 }
   0x5   :  { %p211_p0 = scmp.ne.s32.totalorder %s365_s0, %s210_s21  ;;  %p214_p1 = scmp.lt.u32.totalorder %s210_s21, %s365_s0 }
   0x7   :  { %p216_p2 = pnand %p214_p1, %p211_p0 }
   0x9   :  { %219 = shalt.err (!%p216_p2)
}
   0xa   :  { %s220_s26 = scalar_lea.vmem %s19_s16, 128  ;;  %p225_p4 = scmp.lt.s32.totalorder %s19_s16, %s19_s16 }
   0xb   :  { %p221_p3 = scmp.ne.s32.totalorder %s19_s16, %s220_s26  ;;  %p226_p5 = scmp.lt.s32.totalorder %s220_s26, %s220_s26 }
   0xd   :  { %p227_p6 = por %p226_p5, %p225_p4 }
   0xf   :  { %p228_p7 = pnand %p227_p6, %p221_p3 }
  0x11   :  { %231 = shalt.err (!%p228_p7)
}
  0x12   :  { %21 = dma.hbm_to_vmem [thread:$0]  %s365_s0, 128, %s19_s16, [#allocation3]  }
  0x13   :  { %s232_s5 = scalar_lea.hbm %s366_s1, 512 }
  0x14   :  { %p233_p8 = scmp.ne.s32.totalorder %s366_s1, %s232_s5  ;;  %p236_p9 = scmp.lt.u32.totalorder %s232_s5, %s366_s1 }
  0x16   :  { %p238_p10 = pnand %p236_p9, %p233_p8 }
  0x18   :  { %241 = shalt.err (!%p238_p10)
}
  0x19   :  { %s242_s10 = scalar_lea.vmem %s316_s18, 512  ;;  %p247_p12 = scmp.lt.s32.totalorder %s316_s18, %s316_s18 }
  0x1a   :  { %p243_p11 = scmp.ne.s32.totalorder %s316_s18, %s242_s10  ;;  %p248_p13 = scmp.lt.s32.totalorder %s242_s10, %s242_s10 }
  0x1c   :  { %p249_p0 = por %p248_p13, %p247_p12 }
  0x1e   :  { %p250_p1 = pnand %p249_p0, %p243_p11 }
  0x20   :  { %253 = shalt.err (!%p250_p1)
}
  0x21   :  { %s284_s0 = smov 128   ;;  %s285_s11 = smov 8  }
  0x22   :  { %33 = dma.hbm_to_vmem [thread:$0]  %s366_s1, 512, %s316_s18, [#allocation6], %s284_s0, %s284_s0, %s285_s11  }
  0x23   :  { %276 = dma.done.wait [#allocation3], 128  }
  0x24   :  { %277 = vsyncadd [#allocation3], 4294967168 }
  0x25   :  { %278 = dma.done.wait [#allocation6], 512  }
  0x26   :  { %279 = vsyncadd [#allocation6], 4294966784  ;;  %v286_v0 = vmov 0.0|0.0   ;;  %vm287_vm0 = vmmov 0   ;;  %v288_v1 = vmov 0.0   ;;  %v45_v2 = vld [vmem:[#allocation5] sm:$0xff]  ;;  %v132_v9 = vlaneseq }
  0x27   :  { %191 = vmatprep.subr.bf16.mxu0 %v286_v0  ;;  %188 = vmatprep.mubr.msk.f32.mxu0 %vm287_vm0, %v288_v1  ;;  %v46_v3 = vld [vmem:[#allocation5 + $0x8] sm:$0xff]  ;;  %v47_v4 = vld [vmem:[#allocation5 + $0x10] sm:$0xff]  ;;  %v48_v6 = vld [vmem:[#allocation5 + $0x18] sm:$0xff]  ;;  %vm56_vm1 = vcmask 261120   ;;  %v289_v24 = vmov 0  }
  0x28   :  { %v192_v5 = vpack.c.bf16 %v46_v3, %v45_v2  ;;  %v195_v7 = vpack.c.bf16 %v48_v6, %v47_v4  ;;  %v44_v8 = vld [vmem:[#allocation2] sm:$0xff]  ;;  %v133_v10 = vshrl.u32 %v132_v9, 7 }
  0x29   :  { %v130_v12 = vld [vmem:[%s368_s3] sm:$0x1] }
  0x2a   :  { %193 = vmatpush3.bf16.msra.mxu0 %v192_v5  ;;  %v134_v11 = vsub.s32 0, %v133_v10  ;;  %v173_v13 = vld [vmem:[%s367_s2] ss:$0 sm:$0xff]  ;;  %vm148_vm2 = vcmp.lt.f32.partialorder %v130_v12, 0.0  ;;  %s290_s2 = smov [#allocation7]  }
  0x2b   :  { %194 = vmatprep.subr.bf16.mxu0 %v286_v0  ;;  %v149_v25 = vsel %vm148_vm2, 1, %v289_v24  ;;  %s163_s3 = sshll.u32 %s290_s2, 4  ;;  %s164_s3 = int_to_ptr.vmem [resolvable:$true] %s163_s3 }
  0x2c   :  { %v135_v14 = vrot.slane %v130_v12, %v134_v11  ;;  %v153_v26 = vrot.slane %v149_v25, %v134_v11  ;;  %s254_s17 = scalar_lea.vmem %s164_s3, 128  ;;  %p259_p3 = scmp.lt.s32.totalorder %s164_s3, %s164_s3 }
  0x2d   :  { %p255_p2 = scmp.ne.s32.totalorder %s164_s3, %s254_s17  ;;  %p260_p4 = scmp.lt.s32.totalorder %s254_s17, %s254_s17 }
  0x2e   :  { %196 = vmatpush3.bf16.msra.mxu0 %v195_v7  ;;  %vm154_vm3 = vcmp.eq.s32.totalorder %v153_v26, 1 }
  0x2f   :  { %p261_p5 = por %p260_p4, %p259_p3 }
  0x31   :  { %189 = vmatmul.mubr.msk.f32.vlgmr.msra.gmra.mrb[0].mxu0 %vm56_vm1, %v44_v8  ;;  %p262_p6 = pnand %p261_p5, %p255_p2 }
 0x104   :  { %v126_v15 = vpop.f32.mrb[0].mxu0 }
 0x105   :  { %v127_v16 = vadd.f32 %v173_v13, %v126_v15  ;;  %v190_v17 = vpop.f32.mrb[1].mxu0 }
 0x107   :  { %v137_v18 = vadd.f32 %v135_v14, %v127_v16 }
 0x109   :  { %138 = vmax.xlane.f32.xlu0 %v137_v18 }
 0x196   :  { %v139_v19 = vpop.xlane.xlu0 %138 }
 0x197   :  { %v140_v20 = vsub.f32 %v137_v18, %v139_v19 }
 0x199   :  { %v141_v21 = vmul.f32 1.442695, %v140_v20 }
 0x19b   :  { %206 = vpow2.f32 %v141_v21 }
 0x1a5   :  { %v207_v22 = vpop.eup %206 }
 0x1a6   :  { %143 = vadd.xlane.f32.xlu0 %v207_v22 }
 0x233   :  { %v144_v23 = vpop.xlane.xlu0 %143 }
 0x234   :  { %208 = vlog2.f32 %v144_v23 }
 0x23e   :  { %v209_v27 = vpop.eup %208 }
 0x23f   :  { %v146_v28 = vmul.f32 0.6931472, %v209_v27 }
 0x241   :  { %v147_v29 = vsub.f32 %v140_v20, %v146_v28 }
 0x243   :  { %v155_v30 = vsel %vm154_vm3, %v127_v16, %v147_v29 }
 0x244   :  { %156 = vst [vmem:[#allocation7] sm:$0xff] %v155_v30 }
 0x245   :  { %265 = shalt.err (!%p262_p6)
}
 0x246   :  { %s266_s20 = scalar_lea.hbm %s369_s4, 128 }
 0x247   :  { %p267_p7 = scmp.ne.s32.totalorder %s369_s4, %s266_s20  ;;  %p270_p8 = scmp.lt.u32.totalorder %s266_s20, %s369_s4 }
 0x249   :  { %p272_p9 = pnand %p270_p8, %p267_p7 }
 0x24b   :  { %275 = shalt.err (!%p272_p9)
}
 0x24c   :  { %166 = dma.vmem_to_hbm [thread:$0]  %s164_s3, 128, %s369_s4, [#allocation4]  }
 0x24d   :  { %280 = dma.done.wait [#allocation4], 128  }
 0x24e   :  { %281 = vsyncadd [#allocation4], 4294967168 }
 0x24f   :  { %170 = vsyncpa [#allocation3], 1 }
 0x250   :  { %171 = vsyncpa [#allocation6], 1 }
 0x251   :  { %172 = vsyncpa [#allocation4], 1 }

// kernel: tpu_custom_call.1
= control target key start
LH: loop header
LB: loop body
LE: loop exit
PB: predicated region body
PF: predicated region fallthrough
CT: control target
= control target key end

     0   :  { %9 = vsyncpa [#allocation3], 0  ;;  %s365_s0 = inlined_call_operand.hbm [shape: f32[8,32], index: 0, kind: input, shape index: {}]   ;;  %s366_s1 = inlined_call_operand.hbm [shape: f32[32,128], index: 1, kind: input, shape index: {}]   ;;  %s367_s2 = inlined_call_operand.vmem [shape: f32[1,128], index: 2, kind: input, shape index: {}]   ;;  %s368_s3 = inlined_call_operand.vmem [shape: f32[1,128], index: 3, kind: input, shape index: {}]   ;;  %s369_s4 = inlined_call_operand.hbm [shape: f32[8,128], index: 4, kind: output, shape index: {}]  }
   0x1   :  { %10 = vsyncpa [#allocation6], 0 }
   0x2   :  { %11 = vsyncpa [#allocation4], 0  ;;  %s282_s15 = smov [#allocation2]   ;;  %s283_s17 = smov [#allocation5]  }
   0x3   :  { %s18_s16 = sshll.u32 %s282_s15, 4  ;;  %s27_s18 = sshll.u32 %s283_s17, 4  ;;  %s19_s16 = int_to_ptr.vmem [resolvable:$true] %s18_s16  ;;  %s316_s18 = int_to_ptr.vmem [resolvable:$true] %s27_s18 }
   0x4   :  { %s210_s21 = scalar_lea.hbm %s365_s0, 128 }
   0x5   :  { %p211_p0 = scmp.ne.s32.totalorder %s365_s0, %s210_s21  ;;  %p214_p1 = scmp.lt.u32.totalorder %s210_s21, %s365_s0 }
   0x7   :  { %p216_p2 = pnand %p214_p1, %p211_p0 }
   0x9   :  { %219 = shalt.err (!%p216_p2)
}
   0xa   :  { %s220_s26 = scalar_lea.vmem %s19_s16, 128  ;;  %p225_p4 = scmp.lt.s32.totalorder %s19_s16, %s19_s16 }
   0xb   :  { %p221_p3 = scmp.ne.s32.totalorder %s19_s16, %s220_s26  ;;  %p226_p5 = scmp.lt.s32.totalorder %s220_s26, %s220_s26 }
   0xd   :  { %p227_p6 = por %p226_p5, %p225_p4 }
   0xf   :  { %p228_p7 = pnand %p227_p6, %p221_p3 }
  0x11   :  { %231 = shalt.err (!%p228_p7)
}
  0x12   :  { %21 = dma.hbm_to_vmem [thread:$0]  %s365_s0, 128, %s19_s16, [#allocation3]  }
  0x13   :  { %s232_s5 = scalar_lea.hbm %s366_s1, 512 }
  0x14   :  { %p233_p8 = scmp.ne.s32.totalorder %s366_s1, %s232_s5  ;;  %p236_p9 = scmp.lt.u32.totalorder %s232_s5, %s366_s1 }
  0x16   :  { %p238_p10 = pnand %p236_p9, %p233_p8 }
  0x18   :  { %241 = shalt.err (!%p238_p10)
}
  0x19   :  { %s242_s10 = scalar_lea.vmem %s316_s18, 512  ;;  %p247_p12 = scmp.lt.s32.totalorder %s316_s18, %s316_s18 }
  0x1a   :  { %p243_p11 = scmp.ne.s32.totalorder %s316_s18, %s242_s10  ;;  %p248_p13 = scmp.lt.s32.totalorder %s242_s10, %s242_s10 }
  0x1c   :  { %p249_p0 = por %p248_p13, %p247_p12 }
  0x1e   :  { %p250_p1 = pnand %p249_p0, %p243_p11 }
  0x20   :  { %253 = shalt.err (!%p250_p1)
}
  0x21   :  { %s284_s0 = smov 128   ;;  %s285_s11 = smov 8  }
  0x22   :  { %33 = dma.hbm_to_vmem [thread:$0]  %s366_s1, 512, %s316_s18, [#allocation6], %s284_s0, %s284_s0, %s285_s11  }
  0x23   :  { %276 = dma.done.wait [#allocation3], 128  }
  0x24   :  { %277 = vsyncadd [#allocation3], 4294967168 }
  0x25   :  { %278 = dma.done.wait [#allocation6], 512  }
  0x26   :  { %279 = vsyncadd [#allocation6], 4294966784  ;;  %v286_v0 = vmov 0.0|0.0   ;;  %vm287_vm0 = vmmov 0   ;;  %v288_v1 = vmov 0.0   ;;  %v45_v2 = vld [vmem:[#allocation5] sm:$0xff]  ;;  %v132_v9 = vlaneseq }
  0x27   :  { %191 = vmatprep.subr.bf16.mxu0 %v286_v0  ;;  %188 = vmatprep.mubr.msk.f32.mxu0 %vm287_vm0, %v288_v1  ;;  %v46_v3 = vld [vmem:[#allocation5 + $0x8] sm:$0xff]  ;;  %v47_v4 = vld [vmem:[#allocation5 + $0x10] sm:$0xff]  ;;  %v48_v6 = vld [vmem:[#allocation5 + $0x18] sm:$0xff]  ;;  %vm56_vm1 = vcmask 261120   ;;  %v289_v24 = vmov 0  }
  0x28   :  { %v192_v5 = vpack.c.bf16 %v46_v3, %v45_v2  ;;  %v195_v7 = vpack.c.bf16 %v48_v6, %v47_v4  ;;  %v44_v8 = vld [vmem:[#allocation2] sm:$0xff]  ;;  %v133_v10 = vshrl.u32 %v132_v9, 7 }
  0x29   :  { %v130_v12 = vld [vmem:[%s368_s3] sm:$0x1] }
  0x2a   :  { %193 = vmatpush3.bf16.msra.mxu0 %v192_v5  ;;  %v134_v11 = vsub.s32 0, %v133_v10  ;;  %v173_v13 = vld [vmem:[%s367_s2] ss:$0 sm:$0xff]  ;;  %vm148_vm2 = vcmp.lt.f32.partialorder %v130_v12, 0.0  ;;  %s290_s2 = smov [#allocation7]  }
  0x2b   :  { %194 = vmatprep.subr.bf16.mxu0 %v286_v0  ;;  %v149_v25 = vsel %vm148_vm2, 1, %v289_v24  ;;  %s163_s3 = sshll.u32 %s290_s2, 4  ;;  %s164_s3 = int_to_ptr.vmem [resolvable:$true] %s163_s3 }
  0x2c   :  { %v135_v14 = vrot.slane %v130_v12, %v134_v11  ;;  %v153_v26 = vrot.slane %v149_v25, %v134_v11  ;;  %s254_s17 = scalar_lea.vmem %s164_s3, 128  ;;  %p259_p3 = scmp.lt.s32.totalorder %s164_s3, %s164_s3 }
  0x2d   :  { %p255_p2 = scmp.ne.s32.totalorder %s164_s3, %s254_s17  ;;  %p260_p4 = scmp.lt.s32.totalorder %s254_s17, %s254_s17 }
  0x2e   :  { %196 = vmatpush3.bf16.msra.mxu0 %v195_v7  ;;  %vm154_vm3 = vcmp.eq.s32.totalorder %v153_v26, 1 }
  0x2f   :  { %p261_p5 = por %p260_p4, %p259_p3 }
  0x31   :  { %189 = vmatmul.mubr.msk.f32.vlgmr.msra.gmra.mrb[0].mxu0 %vm56_vm1, %v44_v8  ;;  %p262_p6 = pnand %p261_p5, %p255_p2 }
 0x104   :  { %v126_v15 = vpop.f32.mrb[0].mxu0 }
 0x105   :  { %v127_v16 = vadd.f32 %v173_v13, %v126_v15  ;;  %v190_v17 = vpop.f32.mrb[1].mxu0 }
 0x107   :  { %v137_v18 = vadd.f32 %v135_v14, %v127_v16 }
 0x109   :  { %138 = vmax.xlane.f32.xlu0 %v137_v18 }
 0x196   :  { %v139_v19 = vpop.xlane.xlu0 %138 }
 0x197   :  { %v140_v20 = vsub.f32 %v137_v18, %v139_v19 }
 0x199   :  { %v141_v21 = vmul.f32 1.442695, %v140_v20 }
 0x19b   :  { %206 = vpow2.f32 %v141_v21 }
 0x1a5   :  { %v207_v22 = vpop.eup %206 }
 0x1a6   :  { %143 = vadd.xlane.f32.xlu0 %v207_v22 }
 0x233   :  { %v144_v23 = vpop.xlane.xlu0 %143 }
 0x234   :  { %208 = vlog2.f32 %v144_v23 }
 0x23e   :  { %v209_v27 = vpop.eup %208 }
 0x23f   :  { %v146_v28 = vmul.f32 0.6931472, %v209_v27 }
 0x241   :  { %v147_v29 = vsub.f32 %v140_v20, %v146_v28 }
 0x243   :  { %v155_v30 = vsel %vm154_vm3, %v127_v16, %v147_v29 }
 0x244   :  { %156 = vst [vmem:[#allocation7] sm:$0xff] %v155_v30 }
 0x245   :  { %265 = shalt.err (!%p262_p6)
}
 0x246   :  { %s266_s20 = scalar_lea.hbm %s369_s4, 128 }
 0x247   :  { %p267_p7 = scmp.ne.s32.totalorder %s369_s4, %s266_s20  ;;  %p270_p8 = scmp.lt.u32.totalorder %s266_s20, %s369_s4 }
 0x249   :  { %p272_p9 = pnand %p270_p8, %p267_p7 }
 0x24b   :  { %275 = shalt.err (!%p272_p9)
}
 0x24c   :  { %166 = dma.vmem_to_hbm [thread:$0]  %s164_s3, 128, %s369_s4, [#allocation4]  }
 0x24d   :  { %280 = dma.done.wait [#allocation4], 128  }
 0x24e   :  { %281 = vsyncadd [#allocation4], 4294967168 }
 0x24f   :  { %170 = vsyncpa [#allocation3], 1 }
 0x250   :  { %171 = vsyncpa [#allocation6], 1 }
 0x251   :  { %172 = vsyncpa [#allocation4], 1 }

</bundles_post_ra>
